<compile_context>
chip_gen: v6e
topology: v6e:2x2x1
jax: 0.10.0
libtpu: 0.0.40
codegen_flags: <defaults>
</compile_context>

<pallas_src>
from functools import partial

import jax
import jax.numpy as jnp
import numpy as np
from jax import lax
from jax.experimental import pallas as pl
from jax.experimental.pallas import tpu as pltpu


def dim_reduce_kernel(x_ref, wf_ref, shift_ref, o_ref, *, nonlinear):
    # x_ref:     (Bn, Cin, HW)   activations, spatial (H*W) on the lane axis
    # wf_ref:    (Cout, Cin)     conv weight with BN scale folded in
    # shift_ref: (Cout, 1)       BN shift (beta - running_mean * scale), f32
    # o_ref:     (Bn, Cout, HW)
    bn = x_ref.shape[0]
    cout = o_ref.shape[1]
    hw = o_ref.shape[2]

    # Hoisted out of the image loop: weight load + lane-broadcast of the BN shift.
    wf = wf_ref[...]
    shift_b = jnp.broadcast_to(shift_ref[...], (cout, hw)).astype(jnp.float32)

    def body(b, carry):
        # 1x1 pointwise conv == channel matmul; accumulate in f32 on the MXU.
        y = jnp.dot(wf, x_ref[b], preferred_element_type=jnp.float32)   # (Cout, HW)
        z = y + shift_b                                                  # folded BatchNorm (eval)

        if nonlinear == "relu":
            z = jnp.maximum(z, 0.0)
        elif nonlinear == "leakyrelu":
            z = jnp.where(z >= 0.0, z, 0.1 * z)   # slope 0.1 matches nn.LeakyReLU(0.1) in the module
        elif nonlinear == "hswish":
            z = z * jnp.clip(z + 3.0, 0.0, 6.0) * (1.0 / 6.0)
        # unknown string -> identity (the module appends no nonlinearity in that case)

        o_ref[b] = z.astype(o_ref.dtype)
        return carry

    # Fully unroll only small blocks (LLO scheduler visibility); loop otherwise (no code bloat).
    lax.fori_loop(0, bn, body, 0, unroll=(bn <= 8))


def _pick_batch_block(n, bytes_per_image, target_bytes):
    """Largest divisor of n such that a block moves <= target_bytes, capped at n//2 so the
    'parallel' grid axis has >= 2 steps (lets v7x use both TensorCores)."""
    ideal = max(1, min(int(target_bytes) // max(int(bytes_per_image), 1), n))
    if n >= 2:
        ideal = min(ideal, max(1, n // 2))
    for bb in range(int(ideal), 0, -1):
        if n % bb == 0:
            return bb
    return 1


def dim_reduce(x_nchw, w, gamma, beta, run_mean, run_var, eps=1e-5,
               nonlinear="relu", compute_dtype=jnp.bfloat16, out_dtype=None,
               target_step_bytes=4 << 20):
    """x_nchw: (N, Cin, H, W);  w: (Cout, Cin)  [torch conv.weight (Cout, Cin, 1, 1) squeezed].

    compute_dtype=bf16 halves HBM read traffic (MXU input only; BN shift + nonlinearity stay f32).
    out_dtype defaults to compute_dtype (halves the dominant writeback traffic); pass jnp.float32
    if the consumer needs full precision.  target_step_bytes ~4 MiB is a good default for
    v5e/v6e; raise to ~8 MiB on v7x (faster HBM -> more bandwidth lost per grid-step overhead).
    """
    N, Cin, H, W = x_nchw.shape
    Cout = w.shape[0]
    HW = H * W
    out_dtype = compute_dtype if out_dtype is None else out_dtype

    # Fold eval-mode BatchNorm into the conv weight (conv is linear per output channel).
    inv = (gamma / jnp.sqrt(run_var + eps)).astype(jnp.float32)                # (Cout,)
    wf = (w.astype(jnp.float32) * inv[:, None]).astype(compute_dtype)          # (Cout, Cin)
    shift = (beta - run_mean * inv).reshape(Cout, 1).astype(jnp.float32)       # (Cout, 1)

    # NCHW already has spatial last -> flatten H,W onto the lane axis; no transposes needed.
    x = x_nchw.reshape(N, Cin, HW).astype(compute_dtype)

    in_bpi = Cin * HW * jnp.dtype(compute_dtype).itemsize    # bytes per image, input
    out_bpi = Cout * HW * jnp.dtype(out_dtype).itemsize      # bytes per image, output
    bb = _pick_batch_block(N, in_bpi + out_bpi, target_step_bytes)
    grid = (N // bb,)

    # Explicit VMEM budget: double-buffered in/out blocks + weights + slack.  Set explicitly so
    # larger tiles still compile on v5e (16 MiB default scoped VMEM) and stay inside v7x's 64 MiB.
    step_bytes = bb * (in_bpi + out_bpi)
    weight_bytes = wf.size * wf.dtype.itemsize + shift.size * 4
    vmem_needed = 2 * step_bytes + 4 * weight_bytes + (2 << 20)
    vmem_limit = int(min(max(vmem_needed, 16 << 20), 40 << 20))

    kernel = partial(dim_reduce_kernel, nonlinear=nonlinear)

    out = pl.pallas_call(
        kernel,
        out_shape=jax.ShapeDtypeStruct((N, Cout, HW), out_dtype),
        grid_spec=pltpu.PrefetchScalarGridSpec(
            num_scalar_prefetch=0,
            grid=grid,
            in_specs=[
                pl.BlockSpec((bb, Cin, HW), lambda n: (n, 0, 0)),
                pl.BlockSpec((Cout, Cin), lambda n: (0, 0)),
                pl.BlockSpec((Cout, 1), lambda n: (0, 0)),
            ],
            out_specs=pl.BlockSpec((bb, Cout, HW), lambda n: (n, 0, 0)),
        ),
        # "parallel": batch-block axis can be sharded across v7x's 2 TensorCores; on v5e/v6e the
        # grid is a sequential loop either way.
        compiler_params=pltpu.CompilerParams(
            dimension_semantics=("parallel",),
            vmem_limit_bytes=vmem_limit,
        ),
    )(x, wf, shift)

    return out.reshape(N, Cout, H, W)


def reference(x, w, gamma, beta, run_mean, run_var, eps=1e-5, nonlinear="relu"):
    y = jnp.einsum("oi,nihw->nohw", w, x)
    inv = gamma / jnp.sqrt(run_var + eps)
    z = y * inv[None, :, None, None] + (beta - run_mean * inv)[None, :, None, None]
    if nonlinear == "relu":
        z = jnp.maximum(z, 0.0)
    elif nonlinear == "leakyrelu":
        z = jnp.where(z >= 0.0, z, 0.1 * z)
    elif nonlinear == "hswish":
        z = z * jnp.clip(z + 3.0, 0.0, 6.0) / 6.0
    return z


if __name__ == "__main__":
    key = jax.random.PRNGKey(0)
    k1, k2, k3, k4, k5, k6 = jax.random.split(key, 6)

    Cin, H, W = 4, 16, 16
    Cout = 8

    w = jax.random.normal(k2, (Cout, Cin), jnp.float32) * 0.5             # conv.weight (1x1)
    gamma = 1.0 + 0.1 * jax.random.normal(k3, (Cout,), jnp.float32)       # bn.weight
    beta = 0.1 * jax.random.normal(k4, (Cout,), jnp.float32)              # bn.bias
    run_mean = 0.1 * jax.random.normal(k5, (Cout,), jnp.float32)          # bn.running_mean
    run_var = jax.random.uniform(k6, (Cout,), jnp.float32, minval=0.5, maxval=1.5)

    # --- Tight f32 check (batch_block = 1, grid of 2 steps), all three nonlinearities. ---
    N = 2
    x = jax.random.normal(k1, (N, Cin, H, W), jnp.float32)
    for nl in ("relu", "hswish", "leakyrelu"):
        out = dim_reduce(x, w, gamma, beta, run_mean, run_var, nonlinear=nl,
                         compute_dtype=jnp.float32, out_dtype=jnp.float32)
        out = jax.block_until_ready(out)
        ref = reference(x, w, gamma, beta, run_mean, run_var, nonlinear=nl)
        np.testing.assert_allclose(np.asarray(out), np.asarray(ref), rtol=1e-4, atol=1e-4)

    # --- Default fast path: bf16 compute + bf16 output, multi-image blocks (exercises the
    #     batch_block > 1 / fori_loop path).  Relaxed tolerances for bf16 rounding. ---
    N2 = 8
    x2 = jax.random.normal(k1, (N2, Cin, H, W), jnp.float32)
    out2 = dim_reduce(x2, w, gamma, beta, run_mean, run_var, nonlinear="relu")  # bf16 in/out
    out2 = jax.block_until_ready(out2)
    ref2 = reference(x2, w, gamma, beta, run_mean, run_var, nonlinear="relu")
    np.testing.assert_allclose(np.asarray(out2, dtype=np.float32), np.asarray(ref2),
                               rtol=5e-2, atol=5e-2)

    print("KERNEL_OK")
</pallas_src>

<mosaic_0001>
module attributes {stable_mosaic.version = 11 : i64} {
  func.func @dim_reduce_kernel(%arg0: i32, %arg1: memref<1x4x256xf32, #tpu.memory_space<vmem>>, %arg2: memref<8x4xf32, #tpu.memory_space<vmem>>, %arg3: memref<8x1xf32, #tpu.memory_space<vmem>>, %arg4: memref<1x8x256xf32, #tpu.memory_space<vmem>>) attributes {dimension_semantics = [#tpu.dimension_semantics<parallel>], iteration_bounds = array<i64: 2>, scalar_prefetch = 0 : i64, scratch_operands = 0 : i64, tpu.core_type = #tpu.core_type<tc>, window_params = [{transform_indices = @transform_0, window_bounds = array<i64: 1, 4, 256>}, {pipeline_mode = #tpu.pipeline_mode<synchronous>, transform_indices = @transform_1, window_bounds = array<i64: 8, 4>}, {pipeline_mode = #tpu.pipeline_mode<synchronous>, transform_indices = @transform_2, window_bounds = array<i64: 8, 1>}, {transform_indices = @transform_3, window_bounds = array<i64: 1, 8, 256>}]} {
    %c0 = arith.constant 0 : index
    %c0_0 = arith.constant 0 : index
    %0 = vector.load %arg2[%c0, %c0_0] : memref<8x4xf32, #tpu.memory_space<vmem>>, vector<8x4xf32>
    %c0_1 = arith.constant 0 : index
    %c0_2 = arith.constant 0 : index
    %1 = vector.load %arg3[%c0_1, %c0_2] : memref<8x1xf32, #tpu.memory_space<vmem>>, vector<8x1xf32>
    %2 = vector.shape_cast %1 : vector<8x1xf32> to vector<8x1xf32>
    %3 = vector.broadcast %2 : vector<8x1xf32> to vector<8x256xf32>
    %c0_i32 = arith.constant 0 : i32
    %4 = arith.index_cast %c0_i32 : i32 to index
    %c0_3 = arith.constant 0 : index
    %c0_4 = arith.constant 0 : index
    %5 = vector.load %arg1[%4, %c0_3, %c0_4] : memref<1x4x256xf32, #tpu.memory_space<vmem>>, vector<1x4x256xf32>
    %6 = vector.shape_cast %5 : vector<1x4x256xf32> to vector<4x256xf32>
    %cst = arith.constant dense<0.000000e+00> : vector<8x256xf32>
    %7 = tpu.matmul %0, %6, %cst {dimension_numbers = #tpu.dot_dimension_numbers<[1], [0], [0], [1], [0, 0, 1, 1], [], []>} : vector<8x4xf32>, vector<4x256xf32>, vector<8x256xf32> -> vector<8x256xf32>
    %8 = arith.addf %7, %3 : vector<8x256xf32>
    %cst_5 = arith.constant 0.000000e+00 : f32
    %9 = vector.broadcast %cst_5 : f32 to vector<8x256xf32>
    %10 = arith.maximumf %8, %9 : vector<8x256xf32>
    %11 = arith.index_cast %c0_i32 : i32 to index
    %c0_6 = arith.constant 0 : index
    %c0_7 = arith.constant 0 : index
    %12 = vector.load %arg4[%11, %c0_6, %c0_7] : memref<1x8x256xf32, #tpu.memory_space<vmem>>, vector<1x8x256xf32>
    %13 = vector.shape_cast %12 : vector<1x8x256xf32> to vector<8x256xf32>
    %14 = vector.shape_cast %10 : vector<8x256xf32> to vector<1x8x256xf32>
    tpu.vector_store %arg4[%11, %c0_6, %c0_7], %14 {strides = array<i32>} : memref<1x8x256xf32, #tpu.memory_space<vmem>>, vector<1x8x256xf32>,
    %c1_i32 = arith.constant 1 : i32
    return
  }
  func.func @transform_0(%arg0: i32) -> (i32, i32, i32) {
    %c0_i32 = arith.constant 0 : i32
    %c0_i32_0 = arith.constant 0 : i32
    %c0_i32_1 = arith.constant 0 : i32
    return %arg0, %c0_i32, %c0_i32_0 : i32, i32, i32
  }
  func.func @transform_1(%arg0: i32) -> (i32, i32) {
    %c0_i32 = arith.constant 0 : i32
    %c0_i32_0 = arith.constant 0 : i32
    %c0_i32_1 = arith.constant 0 : i32
    return %c0_i32, %c0_i32_0 : i32, i32
  }
  func.func @transform_2(%arg0: i32) -> (i32, i32) {
    %c0_i32 = arith.constant 0 : i32
    %c0_i32_0 = arith.constant 0 : i32
    %c0_i32_1 = arith.constant 0 : i32
    return %c0_i32, %c0_i32_0 : i32, i32
  }
  func.func @transform_3(%arg0: i32) -> (i32, i32, i32) {
    %c0_i32 = arith.constant 0 : i32
    %c0_i32_0 = arith.constant 0 : i32
    %c0_i32_1 = arith.constant 0 : i32
    return %arg0, %c0_i32, %c0_i32_0 : i32, i32, i32
  }
}

</mosaic_0001>

<bundles_post_ra>
// kernel: tpu_custom_call.1
= control target key start
LH: loop header
LB: loop body
LE: loop exit
PB: predicated region body
PF: predicated region fallthrough
CT: control target
= control target key end

     0   :  { %8 = vsyncpa [#allocation3], 0  ;;  %s575_s0 = inlined_call_operand.vmem [shape: f32[2,4,256], index: 0, kind: input, shape index: {}]   ;;  %s576_s1 = inlined_call_operand.vmem [shape: f32[8,4], index: 1, kind: input, shape index: {}]   ;;  %s577_s2 = inlined_call_operand.vmem [shape: f32[8,1], index: 2, kind: input, shape index: {}]   ;;  %s578_s3 = inlined_call_operand.hbm [shape: f32[2,8,256], index: 3, kind: output, shape index: {}]  }
   0x1   :  { %10 = vsyncpa [#allocation3 + $0x1], 0  ;;  %s482_s12 = smov 0   ;;  %s484_s13 = smov 0  }
   0x2   :  { %s486_s14 = smov 0   ;;  %s488_s15 = smov 0  }
   0x3 LB: > { %s503_s16 = sadd.s32 4294967295, %s457_s15   ;;  %s337_s17 = sadd.s32 4294967294, %s457_s15   ;;  %s457_s15 = sphi %s488_s15, %s584_s15   ;;  %s453_s14 = sphi %s486_s14, %s583_s14   ;;  %s449_s13 = sphi %s484_s13, %s582_s13   ;;  %s445_s12 = sphi %s482_s12, %s581_s12  }
   0x4   : > { %s507_s18 = sadd.s32 1, %s457_s15   ;;  %s91_s19 = sadd.s32 1, %s453_s14 }
   0x5   : > { %s88_s20 = ssub.s32 %s457_s15, %s507_s18  ;;  %p101_p0 = scmp.ne.s32.totalorder %s453_s14, %s449_s13 }
   0x6   : > { %p89_p1 = scmp.eq.s32.totalorder %s88_s20, 0  ;;  %p102_p2 = scmp.eq.s32.totalorder %s503_s16, 1 }
   0x7   : > { %p107_p3 = scmp.ne.s32.totalorder %s449_s13, %s445_s12  ;;  %p108_p4 = scmp.eq.s32.totalorder %s337_s17, 1 }
   0x8   : > { %s518_s21 = scalar_select %p89_p1, %s453_s14, %s91_s19  }
   0x9   : > { %p520_p5 = por %p102_p2, %p101_p0  ;;  %p524_p6 = por %p108_p4, %p107_p3 }
   0xa   : > { %p340_p7 = scmp.ge.s32.totalorder %s457_s15, 1  ;;  %p140_p8 = scmp.lt.s32.totalorder %s457_s15, 3 }
   0xc   : > { %p141_p9 = pnand %p340_p7, %p140_p8 }
   0xd   : > { %p164_p10 = scmp.lt.s32.totalorder (!%p141_p9), %s503_s16, 1  ;;  %s161_s6 = sand.u32 (!%p141_p9), 1, %s449_s13  }
   0xe   : > { %144 = sbr.rel (%p141_p9) target bundleno = 240 (0xf0), region = 32  ;;  %s341_s7 = sshll.u32 (!%p141_p9), %s161_s6, 4 }
   0xf   : > { %s353_s8 = sshll.u32 (!%p141_p9), %s503_s16, 8  ;;  %s163_s9 = scalar_lea.vmem (!%p141_p9), [#allocation2], %s341_s7 }
  0x10   : > { %s278_s10 = sshll.u32 (!%p141_p9), %s163_s9, 4  ;;  %s276_s19 = scalar_lea.hbm (!%p141_p9), %s578_s3, %s353_s8  ;;  %s279_s10 = int_to_ptr.vmem [resolvable:$true] %s278_s10 }
  0x11   : > { %s264_s20 = scalar_lea.sflag (!%p141_p9), [#allocation3], %s161_s6  ;;  %s397_s24 = scalar_lea.vmem (!%p141_p9), %s279_s10, 256 }
  0x12   : > { %p398_p11 = scmp.ne.s32.totalorder (!%p141_p9), %s279_s10, %s397_s24  ;;  %s461_s25 = smov (!%p141_p9), [#allocation2]  }
  0x13   : > { %v459_v0 = vmov 0.0   ;;  %v460_v1 = vmov 0   ;;  %v170_v2 = vld [vmem:[%s577_s2] sm:$0xff]  ;;  %s165_s26 = scalar_select %p164_p10, %s503_s16, 1  ;;  %vm183_vm0 = vcmask 1043456   ;;  %vm179_vm1 = vcmask 31744  }
  0x14   : > { %252 = vmatprep.mubr.f32.mxu0 %v459_v0  ;;  %395 = vset.pattern.permute.xlu0 %v460_v1  ;;  %v169_v5 = vld [vmem:[%s576_s1] sm:$0xff]  ;;  %p399_p12 = pnand %p398_p11, %p520_p5  ;;  %s401_s16 = sshll.u32 %s461_s25, 4  ;;  %s402_s16 = int_to_ptr.vmem [resolvable:$false] %s401_s16 }
  0x15   : > { %173 = vperm.xlu0 %395, %v170_v2   ;;  %s352_s27 = sshll.u32 %s165_s26, 3  ;;  %s403_s26 = scalar_lea.vmem %s402_s16, 512 }
  0x16   : > { %s168_s30 = scalar_lea.vmem %s575_s0, %s352_s27  ;;  %p400_p13 = pneg %p399_p12 }
  0x17   : > { %v176_v3 = vld [vmem:[%s168_s30] sm:$0xff]  ;;  %p404_p0 = scmp.lt.s32.totalorder %s279_s10, %s402_s16  ;;  %p405_p1 = scmp.lt.s32.totalorder %s403_s26, %s397_s24 }
  0x18   : > { %v178_v4 = vcombine.high %v176_v3, %v176_v3 }
  0x19   : > { %p406_p2 = por %p405_p1, %p404_p0 }
  0x1a   : > { %344 = vmatprep.subr.msk.mxu0 %vm183_vm0, %v178_v4 }
  0x1b   : > { %345 = vmatpush1.msk.msra.mxu0 %vm183_vm0, %v176_v3  ;;  %p407_p3 = pnand %p406_p2, %p400_p13 }
  0x1c   : > { %346 = vmatmul.mubr.msk.f32.vlgmr.msra.gmra.mxu0 %vm179_vm1, %v169_v5 }
  0x90   : > { %v174_v6 = vpop.permute.xlu0 %173 }
  0xdc   : > { %v254_v7 = vpop.f32.mrf.mxu0 }
  0xdd   : > { %v255_v8 = vadd.f32 %v254_v7, %v174_v6 }
  0xde   : > { %v256_v9 = vpop.f32.mrf.mxu0 }
  0xdf   : > { %v259_v10 = vmax.f32 %v255_v8, 0.0  ;;  %v257_v11 = vadd.f32 %v256_v9, %v174_v6 }
  0xe1   : > { %261 = vst [vmem:[%s163_s9] sm:$0xff] %v259_v10  ;;  %v260_v12 = vmax.f32 %v257_v11, 0.0 }
  0xe3   : > { %262 = vst [vmem:[%s163_s9 + $0x8] sm:$0xff] %v260_v12 }
  0xe4   : > { %410 = shalt.err (!%p407_p3)
}
  0xe5   : > { %s411_s27 = scalar_lea.hbm %s276_s19, 256  ;;  %s415_s30 = scalar_lea.hbm %s578_s3, 512 }
  0xe6   : > { %p412_p4 = scmp.ne.s32.totalorder %s276_s19, %s411_s27  ;;  %p416_p9 = scmp.lt.s32.totalorder %s276_s19, %s578_s3 }
  0xe7   : > { %p417_p10 = scmp.lt.s32.totalorder %s415_s30, %s411_s27 }
  0xe8   : > { %p413_p7 = pnand %p412_p4, %p520_p5 }
  0xe9   : > { %p418_p11 = por %p417_p10, %p416_p9 }
  0xea   : > { %p414_p8 = pneg %p413_p7 }
  0xec   : > { %p419_p12 = pnand %p418_p11, %p414_p8 }
  0xee   : > { %422 = shalt.err (!%p419_p12)
}
  0xef   : > { %354 = dma.vmem_to_hbm [thread:$0]  (%p520_p5), %s279_s10, 256, %s276_s19, %s264_s20  }
  0xf0 PF: > { %p360_p13 = scmp.ge.s32.totalorder %s457_s15, 2  ;;  %s290_s6 = sand.u32 1, %s445_s12  }
  0xf1   : > { %s291_s7 = scalar_lea.sflag [#allocation3], %s290_s6 }
  0xf2   : > { %p357_p0 = pnand %p360_p13, %p524_p6 }
  0xf4   : > { %p358_p1 = pneg %p357_p0 }
  0xf6   : > { %440 = dma.done.wait (%p358_p1), %s291_s7, 256  }
  0xf7   : > { %442 = vsyncadd (%p358_p1), %s291_s7, 4294967040  ;;  %p13_p2 = scmp.ge.s32.totalorder %s507_s18, 4   ;;  %s581_s12 = smov %s449_s13 }
  0xf8   : > { %s582_s13 = smov %s453_s14  ;;  %s583_s14 = smov %s518_s21 }
  0xf9   : > { %s584_s15 = smov %s507_s18  ;;  %15 = sbr.rel (!%p13_p2) target bundleno = 3 (0x3), region = 67 }
  0xfe   :  { %296 = vsyncpa [#allocation3], 1 }
  0xff   :  { %298 = vsyncpa [#allocation3 + $0x1], 1 }

</bundles_post_ra>
